<compile_context>
chip_gen: v5e
topology: v5e:2x2
jax: 0.10.0
libtpu: 0.0.40
codegen_flags: <defaults>
</compile_context>

<pallas_src>
import functools

import jax
import jax.numpy as jnp
from jax import lax
from jax.experimental import pallas as pl
from jax.experimental.pallas import tpu as pltpu


def _round_up(x, m):
    return ((x + m - 1) // m) * m


def _pick_vmem_limit():
    """~half of physical VMEM (capped), 32 MiB fallback (safe on every chip)."""
    try:
        cap = pltpu.get_tpu_info().vmem_capacity_bytes
    except Exception:
        return 32 * 1024 * 1024
    return int(min(96 * 1024 * 1024, max(32 * 1024 * 1024, cap // 2)))


def _convblock_kernel(x_ref, w_ref, b_ref, o_ref, *, cout):
    """One tile: (tm,16Cin)x(16Cin,NL) matmul -> corner max -> +bias -> ReLU.

    x_ref: (tm, 16*Cin)  pre-flattened 4x4 input patches (one row per pooled pixel)
    w_ref: (16*Cin, NL)  BN-scaled weights; 4 pool corners packed along lanes
    b_ref: (1, Cout)     folded BN shift (f32)
    o_ref: (tm, Cout)    pooled output
    """
    acc = jnp.dot(x_ref[...], w_ref[...],
                  preferred_element_type=jnp.float32)          # (tm, NL) f32
    # 2x2 max-pool: corner c lives in lanes [c*cout, (c+1)*cout). Pool BEFORE
    # bias+ReLU (same bias for every corner, ReLU monotone), so the epilogue
    # only touches (tm, cout).
    m = jnp.maximum(
        jnp.maximum(acc[:, 0 * cout:1 * cout], acc[:, 1 * cout:2 * cout]),
        jnp.maximum(acc[:, 2 * cout:3 * cout], acc[:, 3 * cout:4 * cout]))
    o_ref[...] = jnp.maximum(m + b_ref[...], 0.0).astype(o_ref.dtype)


def my_conv_block(x_nchw, w_oihw, b_conv, gamma, beta, run_mean, run_var,
                  dropout_p=0.2, eps=1e-5, matmul_dtype=jnp.bfloat16,
                  block_m=512):
    """MyConvBlock forward (eval mode). (N, Cin, H, W) -> (N, Cout, H/2, W/2)."""
    del dropout_p                       # Dropout is identity in eval mode.
    N, Cin, H, W = x_nchw.shape
    Cout = w_oihw.shape[0]
    assert H % 2 == 0 and W % 2 == 0
    Hp, Wp = H // 2, W // 2
    Hs, Ws = Hp + 1, Wp + 1
    K = 16 * Cin                        # fused contraction: full 4x4 patch x Cin
    NL = _round_up(4 * Cout, 128)       # lane width: all 4 corners packed together
    M = N * Hp * Wp

    # ---- wrapper glue (small, 4x amplification only): pad + 4x4-patch flatten ----
    x = jnp.transpose(x_nchw, (0, 2, 3, 1)).astype(jnp.float32)      # (N,H,W,Cin)
    xp = jnp.pad(x, ((0, 0), (1, 1), (1, 1), (0, 0)))                # (N,H+2,W+2,Cin)
    # space-to-depth by 2: xs2[n,a,b,(2*py+px)*Cin+c] == xp[n,2a+py,2b+px,c]
    xs2 = xp.reshape(N, Hs, 2, Ws, 2, Cin)
    xs2 = jnp.transpose(xs2, (0, 1, 3, 2, 4, 5)).reshape(N, Hs, Ws, 4 * Cin)
    # The 4x4 patch of pooled pixel (i,j) is the 2x2 neighbourhood of xs2 blocks.
    xflat = jnp.concatenate([xs2[:, :Hp, :Wp], xs2[:, :Hp, 1:],
                             xs2[:, 1:, :Wp], xs2[:, 1:, 1:]], axis=-1)
    xflat = xflat.reshape(M, K).astype(matmul_dtype)

    # ---- fold BatchNorm (eval) into conv weight / bias ----
    scale = gamma / jnp.sqrt(run_var + eps)                          # (Cout,)
    shift = (b_conv - run_mean) * scale + beta                       # (Cout,)
    w_hwio = jnp.transpose(w_oihw * scale[:, None, None, None], (2, 3, 1, 0))

    # ---- weights: patch position (r,s) -> (corner, co); r = dh+kh, s = dw+kw ----
    wk = jnp.zeros((4, 4, Cin, 4, Cout), jnp.float32)                # (r,s,ci,corner,co)
    for dh in range(2):
        for dw in range(2):
            for kh in range(3):
                for kw in range(3):
                    wk = wk.at[dh + kh, dw + kw, :, 2 * dh + dw, :].set(
                        w_hwio[kh, kw])
    # reorder (r,s) -> (da, db, py, px) to match xflat's K layout.
    wk = wk.reshape(2, 2, 2, 2, Cin, 4, Cout)        # (da,py,db,px,ci,corner,co)
    wk = jnp.transpose(wk, (0, 2, 1, 3, 4, 5, 6))    # (da,db,py,px,ci,corner,co)
    wk = wk.reshape(K, 4 * Cout)
    wk = jnp.pad(wk, ((0, 0), (0, NL - 4 * Cout))).astype(matmul_dtype)

    bias = shift.reshape(1, Cout).astype(jnp.float32)

    # ---- M tiling: batch small images into one tile / spatially tile big ones ----
    tm = min(block_m, _round_up(M, 8))
    Mp = _round_up(M, tm)
    if Mp != M:
        xflat = jnp.pad(xflat, ((0, Mp - M), (0, 0)))
    grid = (Mp // tm,)

    flops = 2 * Mp * K * NL
    bytes_accessed = int(xflat.size * xflat.dtype.itemsize
                         + wk.size * wk.dtype.itemsize
                         + Mp * Cout * 4)

    # Output store is exactly Cout lanes wide: for Cout a multiple of 128 it is an
    # unmasked lane-dense store; for tiny Cout it is a narrow masked store but the
    # minimal possible HBM writeback (no per-corner 128-lane padding).
    out_p = pl.pallas_call(
        functools.partial(_convblock_kernel, cout=Cout),
        out_shape=jax.ShapeDtypeStruct((Mp, Cout), jnp.float32),
        grid=grid,
        in_specs=[
            pl.BlockSpec((tm, K), lambda m: (m, 0)),
            pl.BlockSpec((K, NL), lambda m: (0, 0)),
            pl.BlockSpec((1, Cout), lambda m: (0, 0)),
        ],
        out_specs=pl.BlockSpec((tm, Cout), lambda m: (m, 0)),
        compiler_params=pltpu.CompilerParams(
            dimension_semantics=("parallel",),
            vmem_limit_bytes=_pick_vmem_limit()),
        cost_estimate=pl.CostEstimate(flops=flops, transcendentals=0,
                                      bytes_accessed=bytes_accessed),
    )(xflat, wk, bias)

    out = out_p[:M].reshape(N, Hp, Wp, Cout)
    return jnp.transpose(out, (0, 3, 1, 2)).astype(x_nchw.dtype)     # NCHW


def _reference(x_nchw, w_oihw, b_conv, gamma, beta, run_mean, run_var, eps=1e-5):
    """Pure-JAX reference of the same eval-mode forward pass."""
    x = jnp.transpose(x_nchw, (0, 2, 3, 1))
    w_hwio = jnp.transpose(w_oihw, (2, 3, 1, 0))
    y = lax.conv_general_dilated(x, w_hwio, (1, 1), "SAME",
                                 dimension_numbers=("NHWC", "HWIO", "NHWC"))
    y = y + b_conv
    y = (y - run_mean) / jnp.sqrt(run_var + eps) * gamma + beta
    y = jnp.maximum(y, 0.0)
    y = lax.reduce_window(y, -jnp.inf, lax.max,
                          (1, 2, 2, 1), (1, 2, 2, 1), "VALID")
    return jnp.transpose(y, (0, 3, 1, 2))


if __name__ == "__main__":
    N, Cin, Cout, H, W = 2, 4, 8, 16, 16
    dropout_p = 0.2

    key = jax.random.PRNGKey(0)
    k1, k2, k3, k4, k5, k6 = jax.random.split(key, 6)

    x = jax.random.normal(k1, (N, Cin, H, W), jnp.float32)
    w = jax.random.normal(k2, (Cout, Cin, 3, 3), jnp.float32) * 0.1
    b_conv = jax.random.normal(k3, (Cout,), jnp.float32) * 0.05
    gamma = 1.0 + 0.1 * jax.random.normal(k4, (Cout,), jnp.float32)
    beta = 0.1 * jax.random.normal(k5, (Cout,), jnp.float32)
    run_mean = 0.05 * jax.random.normal(k6, (Cout,), jnp.float32)
    run_var = jnp.abs(0.2 * jax.random.normal(k6, (Cout,), jnp.float32)) + 0.8

    ref = _reference(x, w, b_conv, gamma, beta, run_mean, run_var)

    # Exact f32 path (matches PyTorch eval semantics).
    out_f32 = jax.block_until_ready(
        my_conv_block(x, w, b_conv, gamma, beta, run_mean, run_var, dropout_p,
                      matmul_dtype=jnp.float32))
    assert out_f32.shape == (N, Cout, H // 2, W // 2), out_f32.shape
    assert jnp.allclose(out_f32, ref, atol=1e-3, rtol=1e-3), \
        float(jnp.max(jnp.abs(out_f32 - ref)))

    # Default bf16-operand path (f32 accumulation + f32 epilogue).
    out_bf16 = jax.block_until_ready(
        my_conv_block(x, w, b_conv, gamma, beta, run_mean, run_var, dropout_p))
    assert out_bf16.shape == (N, Cout, H // 2, W // 2), out_bf16.shape
    assert jnp.allclose(out_bf16, ref, atol=1e-1, rtol=1e-1), \
        float(jnp.max(jnp.abs(out_bf16 - ref)))

    print("KERNEL_OK")
</pallas_src>

<mosaic_0001>
module attributes {stable_mosaic.version = 11 : i64} {
  func.func @_convblock_kernel(%arg0: i32, %arg1: memref<128x64xf32, #tpu.memory_space<vmem>>, %arg2: memref<64x128xf32, #tpu.memory_space<vmem>>, %arg3: memref<1x8xf32, #tpu.memory_space<vmem>>, %arg4: memref<128x8xf32, #tpu.memory_space<vmem>>) attributes {dimension_semantics = [#tpu.dimension_semantics<parallel>], iteration_bounds = array<i64: 1>, scalar_prefetch = 0 : i64, scratch_operands = 0 : i64, tpu.core_type = #tpu.core_type<tc>, window_params = [{transform_indices = @transform_0, window_bounds = array<i64: 128, 64>}, {pipeline_mode = #tpu.pipeline_mode<synchronous>, transform_indices = @transform_1, window_bounds = array<i64: 64, 128>}, {pipeline_mode = #tpu.pipeline_mode<synchronous>, transform_indices = @transform_2, window_bounds = array<i64: 1, 8>}, {transform_indices = @transform_3, window_bounds = array<i64: 128, 8>}]} {
    %c0 = arith.constant 0 : index
    %c0_0 = arith.constant 0 : index
    %0 = vector.load %arg1[%c0, %c0_0] : memref<128x64xf32, #tpu.memory_space<vmem>>, vector<128x64xf32>
    %c0_1 = arith.constant 0 : index
    %c0_2 = arith.constant 0 : index
    %1 = vector.load %arg2[%c0_1, %c0_2] : memref<64x128xf32, #tpu.memory_space<vmem>>, vector<64x128xf32>
    %cst = arith.constant dense<0.000000e+00> : vector<128x128xf32>
    %2 = tpu.matmul %0, %1, %cst {dimension_numbers = #tpu.dot_dimension_numbers<[1], [0], [0], [1], [0, 0, 1, 1], [], []>} : vector<128x64xf32>, vector<64x128xf32>, vector<128x128xf32> -> vector<128x128xf32>
    %3 = vector.extract_strided_slice %2 {offsets = [0, 0], sizes = [128, 8], strides = [1, 1]} : vector<128x128xf32> to vector<128x8xf32>
    %4 = vector.extract_strided_slice %2 {offsets = [0, 8], sizes = [128, 8], strides = [1, 1]} : vector<128x128xf32> to vector<128x8xf32>
    %5 = arith.maximumf %3, %4 : vector<128x8xf32>
    %6 = vector.extract_strided_slice %2 {offsets = [0, 16], sizes = [128, 8], strides = [1, 1]} : vector<128x128xf32> to vector<128x8xf32>
    %7 = vector.extract_strided_slice %2 {offsets = [0, 24], sizes = [128, 8], strides = [1, 1]} : vector<128x128xf32> to vector<128x8xf32>
    %8 = arith.maximumf %6, %7 : vector<128x8xf32>
    %9 = arith.maximumf %5, %8 : vector<128x8xf32>
    %c0_3 = arith.constant 0 : index
    %c0_4 = arith.constant 0 : index
    %10 = vector.load %arg3[%c0_3, %c0_4] : memref<1x8xf32, #tpu.memory_space<vmem>>, vector<1x8xf32>
    %11 = vector.broadcast %10 : vector<1x8xf32> to vector<128x8xf32>
    %12 = arith.addf %9, %11 : vector<128x8xf32>
    %cst_5 = arith.constant 0.000000e+00 : f32
    %13 = vector.broadcast %cst_5 : f32 to vector<128x8xf32>
    %14 = arith.maximumf %12, %13 : vector<128x8xf32>
    %c0_6 = arith.constant 0 : index
    %c0_7 = arith.constant 0 : index
    %15 = vector.load %arg4[%c0_6, %c0_7] : memref<128x8xf32, #tpu.memory_space<vmem>>, vector<128x8xf32>
    tpu.vector_store %arg4[%c0_6, %c0_7], %14 {strides = array<i32>} : memref<128x8xf32, #tpu.memory_space<vmem>>, vector<128x8xf32>,
    return
  }
  func.func @transform_0(%arg0: i32) -> (i32, i32) {
    %c0_i32 = arith.constant 0 : i32
    %c0_i32_0 = arith.constant 0 : i32
    return %arg0, %c0_i32 : i32, i32
  }
  func.func @transform_1(%arg0: i32) -> (i32, i32) {
    %c0_i32 = arith.constant 0 : i32
    %c0_i32_0 = arith.constant 0 : i32
    %c0_i32_1 = arith.constant 0 : i32
    return %c0_i32, %c0_i32_0 : i32, i32
  }
  func.func @transform_2(%arg0: i32) -> (i32, i32) {
    %c0_i32 = arith.constant 0 : i32
    %c0_i32_0 = arith.constant 0 : i32
    %c0_i32_1 = arith.constant 0 : i32
    return %c0_i32, %c0_i32_0 : i32, i32
  }
  func.func @transform_3(%arg0: i32) -> (i32, i32) {
    %c0_i32 = arith.constant 0 : i32
    %c0_i32_0 = arith.constant 0 : i32
    return %arg0, %c0_i32 : i32, i32
  }
}

</mosaic_0001>

<bundles_post_ra>
// kernel: tpu_custom_call.1
= control target key start
LH: loop header
LB: loop body
LE: loop exit
PB: predicated region body
PF: predicated region fallthrough
CT: control target
= control target key end

     0   :  { %vm38_vm0 = vcmask 523264   ;;  %s412_s5 = smov 120   ;;  %vm348_vm1 = vcmask 64512   ;;  %s683_s1 = inlined_call_operand.vmem [shape: f32[64,128], index: 1, kind: input, shape index: {}]   ;;  %s684_s0 = inlined_call_operand.vmem [shape: f32[128,64], index: 0, kind: input, shape index: {}]   ;;  %s685_s2 = inlined_call_operand.vmem [shape: f32[1,8], index: 2, kind: input, shape index: {}]   ;;  %s686_s3 = inlined_call_operand.vmem [shape: f32[128,8], index: 3, kind: output, shape index: {}]  }
   0x1   :  { %v37_v0 = vld [vmem:[%s683_s1 + $0x38] sm:$0xff]  ;;  %v36_v1 = vld [vmem:[%s683_s1 + $0x30] sm:$0xff]  ;;  %v35_v2 = vld [vmem:[%s683_s1 + $0x28] sm:$0xff] }
   0x2   :  { %95 = vmatpush.msra.mxu0 %v37_v0  ;;  %385 = vmatpush.msra.mxu1 %v37_v0  ;;  %v34_v3 = vld [vmem:[%s683_s1 + $0x20] sm:$0xff]  ;;  %v33_v4 = vld [vmem:[%s683_s1 + $0x18] sm:$0xff]  ;;  %v32_v5 = vld [vmem:[%s683_s1 + $0x10] sm:$0xff] }
   0x3   :  { %386 = vmatpush.msra.mxu2 %v37_v0  ;;  %387 = vmatpush.msra.mxu3 %v37_v0  ;;  %v31_v6 = vld [vmem:[%s683_s1 + $0x8] sm:$0xff]  ;;  %v30_v7 = vld [vmem:[%s683_s1] sm:$0xff]  ;;  %v16_v16 = vld [vmem:[%s684_s0 + $0x10] sm:$0xff] }
   0x4   :  { %96 = vmatpush.msra.mxu0 %v36_v1  ;;  %388 = vmatpush.msra.mxu1 %v36_v1  ;;  %v14_v8 = vld [vmem:[%s684_s0] sm:$0xff]  ;;  %v15_v12 = vld [vmem:[%s684_s0 + $0x8] sm:$0xff]  ;;  %v20_v17 = vld [vmem:[%s684_s0 + $0x30] sm:$0xff] }
   0x5   :  { %389 = vmatpush.msra.mxu2 %v36_v1  ;;  %390 = vmatpush.msra.mxu3 %v36_v1  ;;  %v18_v9 = vld [vmem:[%s684_s0 + $0x20] sm:$0xff]  ;;  %v19_v13 = vld [vmem:[%s684_s0 + $0x28] sm:$0xff]  ;;  %v24_v18 = vld [vmem:[%s684_s0 + $0x50] sm:$0xff] }
   0x6   :  { %97 = vmatpush.msra.mxu0 %v35_v2  ;;  %391 = vmatpush.msra.mxu1 %v35_v2  ;;  %v22_v10 = vld [vmem:[%s684_s0 + $0x40] sm:$0xff]  ;;  %v23_v14 = vld [vmem:[%s684_s0 + $0x48] sm:$0xff]  ;;  %v28_v19 = vld [vmem:[%s684_s0 + $0x70] sm:$0xff] }
   0x7   :  { %392 = vmatpush.msra.mxu2 %v35_v2  ;;  %393 = vmatpush.msra.mxu3 %v35_v2  ;;  %v26_v11 = vld [vmem:[%s684_s0 + $0x60] sm:$0xff]  ;;  %v27_v15 = vld [vmem:[%s684_s0 + $0x68] sm:$0xff]  ;;  %v17_v20 = vld [vmem:[%s684_s0 + $0x18] sm:$0xff] }
   0x8   :  { %98 = vmatpush.msra.mxu0 %v34_v3  ;;  %394 = vmatpush.msra.mxu1 %v34_v3  ;;  %v21_v21 = vld [vmem:[%s684_s0 + $0x38] sm:$0xff] }
   0x9   :  { %395 = vmatpush.msra.mxu2 %v34_v3  ;;  %396 = vmatpush.msra.mxu3 %v34_v3  ;;  %v25_v22 = vld [vmem:[%s684_s0 + $0x58] sm:$0xff] }
   0xa   :  { %99 = vmatpush.msra.mxu0 %v33_v4  ;;  %397 = vmatpush.msra.mxu1 %v33_v4  ;;  %v29_v23 = vld [vmem:[%s684_s0 + $0x78] sm:$0xff]  ;;  %s413_s0 = smov 112  }
   0xb   :  { %398 = vmatpush.msra.mxu2 %v33_v4  ;;  %399 = vmatpush.msra.mxu3 %v33_v4 }
   0xc   :  { %100 = vmatpush.msra.mxu0 %v32_v5  ;;  %400 = vmatpush.msra.mxu1 %v32_v5 }
   0xd   :  { %401 = vmatpush.msra.mxu2 %v32_v5  ;;  %402 = vmatpush.msra.mxu3 %v32_v5 }
   0xe   :  { %101 = vmatpush.msra.mxu0 %v31_v6  ;;  %403 = vmatpush.msra.mxu1 %v31_v6 }
   0xf   :  { %404 = vmatpush.msra.mxu2 %v31_v6  ;;  %405 = vmatpush.msra.mxu3 %v31_v6 }
  0x10   :  { %102 = vmatpush.msra.mxu0 %v30_v7  ;;  %406 = vmatpush.msra.mxu1 %v30_v7 }
  0x11   :  { %407 = vmatpush.msra.mxu2 %v30_v7  ;;  %408 = vmatpush.msra.mxu3 %v30_v7 }
  0x12   :  { %369 = vmatmul.msk.f32.vlgmr.msra.gmra.mxu0 %vm38_vm0, %v14_v8  ;;  %373 = vmatmul.msk.f32.vlgmr.msra.gmra.mxu1 %vm38_vm0, %v18_v9  ;;  %v591_v8 = vld [vmem:[%s685_s2] ss:$0 sm:$0xff] }
  0x13   :  { %377 = vmatmul.msk.f32.vlgmr.msra.gmra.mxu2 %vm38_vm0, %v22_v10  ;;  %381 = vmatmul.msk.f32.vlgmr.msra.gmra.mxu3 %vm38_vm0, %v26_v11 }
  0x1a   :  { %370 = vmatmul.msk.f32.gmra.mxu0 %vm38_vm0, %v15_v12  ;;  %374 = vmatmul.msk.f32.gmra.mxu1 %vm38_vm0, %v19_v13 }
  0x1b   :  { %378 = vmatmul.msk.f32.gmra.mxu2 %vm38_vm0, %v23_v14  ;;  %382 = vmatmul.msk.f32.gmra.mxu3 %vm38_vm0, %v27_v15 }
  0x22   :  { %371 = vmatmul.msk.f32.gmra.mxu0 %vm38_vm0, %v16_v16  ;;  %375 = vmatmul.msk.f32.gmra.mxu1 %vm38_vm0, %v20_v17 }
  0x23   :  { %379 = vmatmul.msk.f32.gmra.mxu2 %vm38_vm0, %v24_v18  ;;  %383 = vmatmul.msk.f32.gmra.mxu3 %vm38_vm0, %v28_v19 }
  0x2a   :  { %372 = vmatmul.msk.f32.gmra.mxu0 %vm38_vm0, %v17_v20  ;;  %376 = vmatmul.msk.f32.gmra.mxu1 %vm38_vm0, %v21_v21 }
  0x2b   :  { %380 = vmatmul.msk.f32.gmra.mxu2 %vm38_vm0, %v25_v22  ;;  %384 = vmatmul.msk.f32.gmra.mxu3 %vm38_vm0, %v29_v23 }
  0x8f   :  { %v104_v24 = vpop.f32.mrf.mxu0  ;;  %v116_v25 = vpop.f32.mrf.mxu1 }
  0x90   :  { %176 = vrot.lane.b32.xlu2 %v116_v25, %s412_s5  ;;  %168 = vrot.lane.b32.xlu0 %v104_v24, %s412_s5 }
  0x96   :  { %v128_v26 = vpop.f32.mrf.mxu2  ;;  %v140_v27 = vpop.f32.mrf.mxu3 }
  0x97   :  { %v107_v28 = vpop.f32.mrf.mxu0  ;;  %v119_v29 = vpop.f32.mrf.mxu1 }
  0x98   :  { %184 = vrot.lane.b32.xlu2 %v128_v26, %s412_s5  ;;  %192 = vrot.lane.b32.xlu0 %v140_v27, %s412_s5 }
  0x9e   :  { %v131_v30 = vpop.f32.mrf.mxu2  ;;  %v526_v31 = vpop.f32.mrf.mxu3 }
  0x9f   :  { %194 = vrot.lane.b32.xlu1 %v526_v31, %s412_s5  ;;  %v110_v32 = vpop.f32.mrf.mxu0  ;;  %v122_v35 = vpop.f32.mrf.mxu1 }
  0xa0   :  { %178 = vrot.lane.b32.xlu2 %v119_v29, %s412_s5  ;;  %170 = vrot.lane.b32.xlu0 %v107_v28, %s412_s5 }
  0xa6   :  { %v134_v33 = vpop.f32.mrf.mxu2  ;;  %v146_v34 = vpop.f32.mrf.mxu3 }
  0xa7   :  { %172 = vrot.lane.b32.xlu1 %v110_v32, %s412_s5  ;;  %v113_v37 = vpop.f32.mrf.mxu0  ;;  %v125_v39 = vpop.f32.mrf.mxu1 }
  0xa8   :  { %186 = vrot.lane.b32.xlu0 %v131_v30, %s412_s5 }
  0xae   :  { %v137_v36 = vpop.f32.mrf.mxu2  ;;  %v149_v38 = vpop.f32.mrf.mxu3 }
  0xaf   :  { %190 = vrot.lane.b32.xlu2 %v137_v36, %s412_s5  ;;  %188 = vrot.lane.b32.xlu1 %v134_v33, %s412_s5 }
  0xb0   :  { %180 = vrot.lane.b32.xlu0 %v122_v35, %s412_s5 }
  0xb7   :  { %196 = vrot.lane.b32.xlu2 %v146_v34, %s412_s5  ;;  %174 = vrot.lane.b32.xlu1 %v113_v37, %s412_s5 }
  0xb8   :  { %198 = vrot.lane.b32.xlu0 %v149_v38, %s412_s5 }
  0xbf   :  { %182 = vrot.lane.b32.xlu1 %v125_v39, %s412_s5 }
  0xea   :  { %v177_v40 = vpop.permute.xlu2 %176 }
  0xeb   :  { %v220_v41 = vmax.f32 %v116_v25, %v177_v40 }
  0xed   :  { %256 = vrot.lane.b32.xlu2 %v220_v41, %s413_s0 }
  0xf2   :  { %v185_v42 = vpop.permute.xlu2 %184 }
  0xf3   :  { %v224_v43 = vmax.f32 %v128_v26, %v185_v42 }
  0xf5   :  { %264 = vrot.lane.b32.xlu0 %v224_v43, %s413_s0 }
  0xfa   :  { %v179_v44 = vpop.permute.xlu2 %178 }
  0xfb   :  { %v221_v45 = vmax.f32 %v119_v29, %v179_v44 }
  0xfd   :  { %258 = vrot.lane.b32.xlu0 %v221_v45, %s413_s0 }
 0x102   :  { %v169_v46 = vpop.permute.xlu0 %168 }
 0x103   :  { %v544_v47 = vmax.f32 %v104_v24, %v169_v46 }
 0x105   :  { %248 = vrot.lane.b32.xlu1 %v544_v47, %s413_s0 }
 0x109   :  { %v191_v57 = vpop.permute.xlu2 %190 }
 0x10a   :  { %v193_v48 = vpop.permute.xlu0 %192  ;;  %v561_v59 = vmax.f32 %v137_v36, %v191_v57 }
 0x10b   :  { %v548_v49 = vmax.f32 %v140_v27, %v193_v48 }
 0x10d   :  { %272 = vrot.lane.b32.xlu1 %v548_v49, %s413_s0 }
 0x111   :  { %v195_v50 = vpop.permute.xlu1 %194  ;;  %v197_v63 = vpop.permute.xlu2 %196 }
 0x112   :  { %v171_v51 = vpop.permute.xlu0 %170  ;;  %v570_v1 = vmax.f32 %v146_v34, %v197_v63  ;;  %v584_v7 = vmax.f32 %v526_v31, %v195_v50 }
 0x113   :  { %v217_v52 = vmax.f32 %v107_v28, %v171_v51 }
 0x115   :  { %250 = vrot.lane.b32.xlu2 %v217_v52, %s413_s0 }
 0x119   :  { %v173_v53 = vpop.permute.xlu1 %172 }
 0x11a   :  { %v553_v54 = vmax.f32 %v110_v32, %v173_v53  ;;  %v187_v55 = vpop.permute.xlu0 %186 }
 0x11b   :  { %v555_v56 = vmax.f32 %v131_v30, %v187_v55 }
 0x11c   :  { %252 = vrot.lane.b32.xlu0 %v553_v54, %s413_s0 }
 0x11d   :  { %266 = vrot.lane.b32.xlu1 %v555_v56, %s413_s0 }
 0x121   :  { %v189_v58 = vpop.permute.xlu1 %188 }
 0x122   :  { %v226_v60 = vmax.f32 %v134_v33, %v189_v58  ;;  %v181_v61 = vpop.permute.xlu0 %180 }
 0x123   :  { %v563_v62 = vmax.f32 %v122_v35, %v181_v61 }
 0x124   :  { %270 = vrot.lane.b32.xlu0 %v561_v59, %s413_s0  ;;  %268 = vrot.lane.b32.xlu2 %v226_v60, %s413_s0 }
 0x125   :  { %260 = vrot.lane.b32.xlu1 %v563_v62, %s413_s0 }
 0x129   :  { %v175_v0 = vpop.permute.xlu1 %174 }
 0x12a   :  { %v572_v2 = vmax.f32 %v113_v37, %v175_v0  ;;  %v199_v3 = vpop.permute.xlu0 %198 }
 0x12b   :  { %v578_v6 = vmax.f32 %v149_v38, %v199_v3 }
 0x12c   :  { %276 = vrot.lane.b32.xlu0 %v570_v1, %s413_s0 }
 0x12d   :  { %254 = vrot.lane.b32.xlu1 %v572_v2, %s413_s0 }
 0x131   :  { %v183_v4 = vpop.permute.xlu1 %182 }
 0x132   :  { %v223_v5 = vmax.f32 %v125_v39, %v183_v4 }
 0x134   :  { %262 = vrot.lane.b32.xlu2 %v223_v5, %s413_s0 }
 0x135   :  { %278 = vrot.lane.b32.xlu1 %v578_v6, %s413_s0 }
 0x13c   :  { %274 = vrot.lane.b32.xlu2 %v584_v7, %s413_s0 }
 0x147   :  { %v257_v9 = vpop.permute.xlu2 %256 }
 0x148   :  { %v300_v10 = vmax.f32 %v220_v41, %v257_v9 }
 0x14a   :  { %v320_v11 = vadd.f32 %v591_v8, %v300_v10 }
 0x14c   :  { %v336_v12 = vmax.f32 %v320_v11, 0.0 }
 0x14e   :  { %353 = vst.msk [vmem:[%s686_s3 + $0x20] sm:$0xff] %vm348_vm1, %v336_v12 }
 0x167   :  { %v265_v13 = vpop.permute.xlu0 %264 }
 0x168   :  { %v304_v14 = vmax.f32 %v224_v43, %v265_v13 }
 0x16a   :  { %v324_v15 = vadd.f32 %v591_v8, %v304_v14 }
 0x16c   :  { %v340_v16 = vmax.f32 %v324_v15, 0.0 }
 0x16e   :  { %357 = vst.msk [vmem:[%s686_s3 + $0x40] sm:$0xff] %vm348_vm1, %v340_v16 }
 0x16f   :  { %v251_v17 = vpop.permute.xlu2 %250  ;;  %v259_v18 = vpop.permute.xlu0 %258 }
 0x170   :  { %v297_v19 = vmax.f32 %v217_v52, %v251_v17  ;;  %v301_v20 = vmax.f32 %v221_v45, %v259_v18 }
 0x172   :  { %v317_v21 = vadd.f32 %v591_v8, %v297_v19  ;;  %v321_v22 = vadd.f32 %v591_v8, %v301_v20 }
 0x174   :  { %v333_v23 = vmax.f32 %v317_v21, 0.0  ;;  %v337_v24 = vmax.f32 %v321_v22, 0.0 }
 0x176   :  { %350 = vst.msk [vmem:[%s686_s3 + $0x8] sm:$0xff] %vm348_vm1, %v333_v23 }
 0x177   :  { %354 = vst.msk [vmem:[%s686_s3 + $0x28] sm:$0xff] %vm348_vm1, %v337_v24  ;;  %v249_v25 = vpop.permute.xlu1 %248 }
 0x178   :  { %v296_v26 = vmax.f32 %v544_v47, %v249_v25 }
 0x17a   :  { %v316_v27 = vadd.f32 %v591_v8, %v296_v26 }
 0x17c   :  { %v332_v28 = vmax.f32 %v316_v27, 0.0 }
 0x17e   :  { %349 = vst.msk [vmem:[%s686_s3] sm:$0xff] %vm348_vm1, %v332_v28  ;;  %v269_v29 = vpop.permute.xlu2 %268 }
 0x17f   :  { %v306_v30 = vmax.f32 %v226_v60, %v269_v29  ;;  %v273_v31 = vpop.permute.xlu1 %272 }
 0x180   :  { %v308_v32 = vmax.f32 %v548_v49, %v273_v31 }
 0x181   :  { %v326_v33 = vadd.f32 %v591_v8, %v306_v30 }
 0x182   :  { %v328_v34 = vadd.f32 %v591_v8, %v308_v32 }
 0x183   :  { %v342_v35 = vmax.f32 %v326_v33, 0.0 }
 0x184   :  { %v344_v36 = vmax.f32 %v328_v34, 0.0 }
 0x185   :  { %359 = vst.msk [vmem:[%s686_s3 + $0x50] sm:$0xff] %vm348_vm1, %v342_v35 }
 0x186   :  { %361 = vst.msk [vmem:[%s686_s3 + $0x60] sm:$0xff] %vm348_vm1, %v344_v36 }
 0x18e   :  { %v253_v37 = vpop.permute.xlu0 %252  ;;  %v263_v38 = vpop.permute.xlu2 %262 }
 0x18f   :  { %v298_v39 = vmax.f32 %v553_v54, %v253_v37  ;;  %v303_v40 = vmax.f32 %v223_v5, %v263_v38  ;;  %v267_v41 = vpop.permute.xlu1 %266 }
 0x190   :  { %v305_v42 = vmax.f32 %v555_v56, %v267_v41 }
 0x191   :  { %v318_v43 = vadd.f32 %v591_v8, %v298_v39  ;;  %v323_v44 = vadd.f32 %v591_v8, %v303_v40 }
 0x192   :  { %v325_v45 = vadd.f32 %v591_v8, %v305_v42 }
 0x193   :  { %v334_v46 = vmax.f32 %v318_v43, 0.0  ;;  %v339_v47 = vmax.f32 %v323_v44, 0.0 }
 0x194   :  { %v341_v48 = vmax.f32 %v325_v45, 0.0 }
 0x195   :  { %351 = vst.msk [vmem:[%s686_s3 + $0x10] sm:$0xff] %vm348_vm1, %v334_v46 }
 0x196   :  { %356 = vst.msk [vmem:[%s686_s3 + $0x38] sm:$0xff] %vm348_vm1, %v339_v47  ;;  %v271_v49 = vpop.permute.xlu0 %270  ;;  %v275_v50 = vpop.permute.xlu2 %274 }
 0x197   :  { %358 = vst.msk [vmem:[%s686_s3 + $0x48] sm:$0xff] %vm348_vm1, %v341_v48  ;;  %v307_v51 = vmax.f32 %v561_v59, %v271_v49  ;;  %v309_v52 = vmax.f32 %v584_v7, %v275_v50  ;;  %v261_v53 = vpop.permute.xlu1 %260 }
 0x198   :  { %v302_v54 = vmax.f32 %v563_v62, %v261_v53 }
 0x199   :  { %v327_v55 = vadd.f32 %v591_v8, %v307_v51  ;;  %v329_v56 = vadd.f32 %v591_v8, %v309_v52 }
 0x19a   :  { %v322_v57 = vadd.f32 %v591_v8, %v302_v54 }
 0x19b   :  { %v343_v58 = vmax.f32 %v327_v55, 0.0  ;;  %v345_v60 = vmax.f32 %v329_v56, 0.0 }
 0x19c   :  { %v338_v61 = vmax.f32 %v322_v57, 0.0 }
 0x19d   :  { %360 = vst.msk [vmem:[%s686_s3 + $0x58] sm:$0xff] %vm348_vm1, %v343_v58 }
 0x19e   :  { %362 = vst.msk [vmem:[%s686_s3 + $0x68] sm:$0xff] %vm348_vm1, %v345_v60  ;;  %v277_v59 = vpop.permute.xlu0 %276 }
 0x19f   :  { %355 = vst.msk [vmem:[%s686_s3 + $0x30] sm:$0xff] %vm348_vm1, %v338_v61  ;;  %v310_v62 = vmax.f32 %v570_v1, %v277_v59  ;;  %v255_v63 = vpop.permute.xlu1 %254 }
 0x1a0   :  { %v299_v0 = vmax.f32 %v572_v2, %v255_v63 }
 0x1a1   :  { %v330_v3 = vadd.f32 %v591_v8, %v310_v62 }
 0x1a2   :  { %v319_v4 = vadd.f32 %v591_v8, %v299_v0 }
 0x1a3   :  { %v346_v5 = vmax.f32 %v330_v3, 0.0 }
 0x1a4   :  { %v335_v7 = vmax.f32 %v319_v4, 0.0 }
 0x1a5   :  { %363 = vst.msk [vmem:[%s686_s3 + $0x70] sm:$0xff] %vm348_vm1, %v346_v5 }
 0x1a6   :  { %352 = vst.msk [vmem:[%s686_s3 + $0x18] sm:$0xff] %vm348_vm1, %v335_v7 }
 0x1a7   :  { %v279_v1 = vpop.permute.xlu1 %278 }
 0x1a8   :  { %v311_v9 = vmax.f32 %v578_v6, %v279_v1 }
 0x1aa   :  { %v331_v2 = vadd.f32 %v591_v8, %v311_v9 }
 0x1ac   :  { %v347_v10 = vmax.f32 %v331_v2, 0.0 }
 0x1ae   :  { %364 = vst.msk [vmem:[%s686_s3 + $0x78] sm:$0xff] %vm348_vm1, %v347_v10 }

</bundles_post_ra>
